<compile_context>
chip_gen: v6e
topology: v6e:2x2x1
jax: 0.10.0
libtpu: 0.0.40
codegen_flags: <defaults>
</compile_context>

<pallas_src>
import math

import numpy as np
import jax
import jax.numpy as jnp
from jax.experimental import pallas as pl
from jax.experimental.pallas import tpu as pltpu


BATCH_TILE = 8                 # f32 sublane height; bigger batches amortize weight DMA
MXU_DTYPE = jnp.bfloat16       # weight / MXU-input dtype (native on v5e/v6e/v7x MXUs)
ACC_DTYPE = jnp.float32        # accumulation / activation dtype


# ----------------------------- fused Pallas kernel -----------------------------

def make_fused_cnn_kernel(conv_fpads, n_dense):
    """Whole-CNN forward in one kernel body (per BATCH_TILE-row batch tile).

    Ref order: x, [T, bias_row] per conv layer, [W, b] per dense layer,
               W_out, b_out, out.

    Each conv layer (conv + folded BN + ReLU + 2x2 max-pool) is ONE matmul against
    the merged pool-offset Toeplitz operator T : (F_in, 4*F_out) (BN scale folded
    in host-side), followed by an elementwise max over the four F_out-wide offset
    slices, a (1, F_out) bias add and ReLU.  All intermediates stay in vregs/VMEM.
    """

    def kernel(*refs):
        x_ref, rest, o_ref = refs[0], list(refs[1:-1]), refs[-1]
        act = x_ref[...]                                    # (TB, F_in) f32, NCHW order

        for fpad in conv_fpads:
            t_ref, b_ref = rest[0], rest[1]
            rest = rest[2:]
            # One lane-dense matmul for all 4 pool-window offsets (bf16 MXU, f32 acc).
            z = jnp.dot(act.astype(MXU_DTYPE), t_ref[...],
                        preferred_element_type=ACC_DTYPE)   # (TB, 4*fpad)
            # 2x2 max-pool == elementwise max over the 4 offset slices.
            m = jnp.maximum(
                jnp.maximum(z[:, 0 * fpad:1 * fpad], z[:, 1 * fpad:2 * fpad]),
                jnp.maximum(z[:, 2 * fpad:3 * fpad], z[:, 3 * fpad:4 * fpad]))
            # Folded conv-bias/BN shift (same for every offset) + ReLU after the max
            # is exact because ReLU is monotone.
            act = jnp.maximum(m + b_ref[...], 0.0)          # (TB, fpad)

        # TODO(synk): Dropout is identity (inference mode); no stochastic masking.
        for _ in range(n_dense):
            w_ref, b_ref = rest[0], rest[1]
            rest = rest[2:]
            act = jnp.maximum(
                jnp.dot(act.astype(MXU_DTYPE), w_ref[...],
                        preferred_element_type=ACC_DTYPE) + b_ref[...], 0.0)

        wo_ref, bo_ref = rest
        logits = jnp.dot(act.astype(MXU_DTYPE), wo_ref[...],
                         preferred_element_type=ACC_DTYPE) + bo_ref[...]
        o_ref[...] = logits.astype(o_ref.dtype)

    return kernel


# ------------------ host-side (numpy) weight preprocessing ---------------------

def build_conv_operands(params_conv, kernel_sizes, img_size, eps=1e-5):
    """Fold each conv layer (conv + bias + BN) into (T, bias_row, fpad).

    T : (Cin*HWpad_in, 4*fpad) bf16 — merged "unrolled conv" (Toeplitz) operator,
        one fpad-wide column block per 2x2 pool-window offset o = 2a+b, with the
        BatchNorm scale already folded into the columns.  Output features inside
        a block are ordered (c_out, padded (h, w)) == NCHW flatten; padding
        columns are zero.  All layers except the last pad the per-channel pooled
        block so fpad is a multiple of 128 lanes; the last layer keeps the exact
        NCHW flatten so the dense weights consume it directly.
    bias_row : (1, fpad) f32 — folded conv bias + BN shift (zero on pad columns).
    """
    ops = []
    n_layers = len(params_conv)
    cin, hin, hwpad_in = 1, img_size, img_size * img_size
    for li, (p, K) in enumerate(zip(params_conv, kernel_sizes)):
        w = np.asarray(p["w"], dtype=np.float32)             # (K, K, Cin, Cout) HWIO
        cout = w.shape[-1]
        hp = (hin - K + 1) // 2                               # MaxPool2d(2,2), floor mode

        scale_c = (np.asarray(p["gamma"], np.float32)
                   / np.sqrt(np.asarray(p["var"], np.float32) + eps))
        bias_c = ((np.asarray(p["b"], np.float32) - np.asarray(p["mean"], np.float32))
                  * scale_c + np.asarray(p["beta"], np.float32))
        ws = w * scale_c[None, None, None, :]                 # fold BN scale into weights

        if li + 1 < n_layers:                                 # lane-align intermediates
            q = 128 // math.gcd(cout, 128)
            hwpad_out = -(-(hp * hp) // q) * q
        else:                                                 # last layer: exact flatten
            hwpad_out = hp * hp
        fpad = cout * hwpad_out

        T = np.zeros((cin, hwpad_in, 4, cout, hwpad_out), dtype=np.float32)
        for a in range(2):
            for b in range(2):
                o = 2 * a + b
                for kh in range(K):
                    for kw in range(K):
                        for ph in range(hp):
                            for pw in range(hp):
                                src = (2 * ph + a + kh) * hin + (2 * pw + b + kw)
                                T[:, src, o, :, ph * hp + pw] += ws[kh, kw]
        T = T.reshape(cin * hwpad_in, 4 * fpad)

        b_blk = np.zeros((cout, hwpad_out), dtype=np.float32)
        b_blk[:, : hp * hp] = bias_c[:, None]
        bias_row = b_blk.reshape(1, fpad)

        ops.append((jnp.asarray(T, dtype=MXU_DTYPE),
                    jnp.asarray(bias_row, dtype=jnp.float32),
                    fpad))
        cin, hin, hwpad_in = cout, hp, hwpad_out
    return ops


# ------------------------------ pallas_call wrapper -----------------------------

def cnn_forward(x_nchw, params, kernel_sizes, img_size):
    n = x_nchw.shape[0]
    n_classes = params["out"]["w"].shape[1]
    conv_ops = build_conv_operands(params["conv"], kernel_sizes, img_size)

    # Only out-of-kernel data ops: NCHW flatten (free reshape) + batch pad to tile.
    x_flat = x_nchw.reshape(n, -1).astype(jnp.float32)
    n_pad = pl.cdiv(n, BATCH_TILE) * BATCH_TILE
    if n_pad != n:
        x_flat = jnp.pad(x_flat, ((0, n_pad - n), (0, 0)))

    weight_args = []
    for T, bias_row, _ in conv_ops:
        weight_args += [T, bias_row]
    for p in params["dense"]:
        weight_args += [jnp.asarray(p["w"], MXU_DTYPE),
                        jnp.asarray(p["b"], jnp.float32).reshape(1, -1)]
    weight_args += [jnp.asarray(params["out"]["w"], MXU_DTYPE),
                    jnp.asarray(params["out"]["b"], jnp.float32).reshape(1, -1)]
    args = [x_flat] + weight_args

    # Advisory cost estimate (helps XLA overlap this tiny custom call).
    mm_shapes = ([tuple(T.shape) for T, _, _ in conv_ops]
                 + [tuple(p["w"].shape) for p in params["dense"]]
                 + [tuple(params["out"]["w"].shape)])
    flops = 2 * n_pad * sum(k * m for k, m in mm_shapes)
    bytes_accessed = (sum(int(np.prod(a.shape)) * a.dtype.itemsize for a in args)
                      + n_pad * n_classes * 4)

    kernel = make_fused_cnn_kernel([f for _, _, f in conv_ops], len(params["dense"]))

    # Batch tiles go through a "parallel" grid axis (split over v7x's 2 TensorCores
    # for larger batches); weights are whole-array VMEM residents (~0.6 MiB bf16),
    # never re-fetched or double-buffered per batch tile.
    out = pl.pallas_call(
        kernel,
        out_shape=jax.ShapeDtypeStruct((n_pad, n_classes), jnp.float32),
        grid=(n_pad // BATCH_TILE,),
        in_specs=([pl.BlockSpec((BATCH_TILE, x_flat.shape[1]), lambda i: (i, 0))]
                  + [pl.BlockSpec(memory_space=pltpu.MemorySpace.VMEM)
                     for _ in weight_args]),
        out_specs=pl.BlockSpec((BATCH_TILE, n_classes), lambda i: (i, 0)),
        compiler_params=pltpu.CompilerParams(dimension_semantics=("parallel",)),
        cost_estimate=pl.CostEstimate(flops=flops, transcendentals=0,
                                      bytes_accessed=bytes_accessed),
    )(*args)
    return out[:n]


# --------------------------------- params / ref ---------------------------------

def init_params(key, channels, kernel_sizes, dense_layers, n_classes, conv_flat_size):
    params = {"conv": [], "dense": []}
    cin = 1
    for cout, k in zip(channels, kernel_sizes):
        key, k1, k2 = jax.random.split(key, 3)
        w = jax.random.normal(k1, (k, k, cin, cout), jnp.float32) / math.sqrt(k * k * cin)
        b = jax.random.normal(k2, (cout,), jnp.float32) * 0.01
        params["conv"].append(dict(
            w=w, b=b,
            gamma=jnp.ones((cout,), jnp.float32),   # PyTorch BatchNorm2d defaults
            beta=jnp.zeros((cout,), jnp.float32),
            mean=jnp.zeros((cout,), jnp.float32),
            var=jnp.ones((cout,), jnp.float32)))
        cin = cout
    din = conv_flat_size
    for dout in dense_layers:
        key, k1, k2 = jax.random.split(key, 3)
        params["dense"].append(dict(
            w=jax.random.normal(k1, (din, dout), jnp.float32) / math.sqrt(din),
            b=jax.random.normal(k2, (dout,), jnp.float32) * 0.01))
        din = dout
    key, k1, k2 = jax.random.split(key, 3)
    params["out"] = dict(
        w=jax.random.normal(k1, (din, n_classes), jnp.float32) / math.sqrt(din),
        b=jax.random.normal(k2, (n_classes,), jnp.float32) * 0.01)
    return params


def bf16_roundtrip_weights(params):
    """Round-trip the matmul weights through bf16 (same quantization the kernel uses),
    so the kernel/reference comparison isolates in-kernel activation rounding."""
    rt = lambda w: jnp.asarray(w, jnp.bfloat16).astype(jnp.float32)
    return {
        "conv": [dict(p, w=rt(p["w"])) for p in params["conv"]],
        "dense": [dict(p, w=rt(p["w"])) for p in params["dense"]],
        "out": dict(params["out"], w=rt(params["out"]["w"])),
    }


def reference_forward(x_nchw, params, kernel_sizes, eps=1e-5):
    """Plain-JAX/XLA reference of the same forward pass (HIGHEST precision)."""
    hi = jax.lax.Precision.HIGHEST
    x = x_nchw.astype(jnp.float32)
    for p, K in zip(params["conv"], kernel_sizes):
        x = jax.lax.conv_general_dilated(
            x, p["w"], window_strides=(1, 1), padding="VALID",
            dimension_numbers=("NCHW", "HWIO", "NCHW"), precision=hi)
        x = x + p["b"][None, :, None, None]
        scale = p["gamma"] / jnp.sqrt(p["var"] + eps)
        x = (x - p["mean"][None, :, None, None]) * scale[None, :, None, None] \
            + p["beta"][None, :, None, None]
        x = jnp.maximum(x, 0.0)
        x = jax.lax.reduce_window(x, -jnp.inf, jax.lax.max,
                                  (1, 1, 2, 2), (1, 1, 2, 2), "VALID")
    x = x.reshape(x.shape[0], -1)                           # NCHW flatten
    for p in params["dense"]:
        x = jnp.maximum(jnp.dot(x, p["w"], precision=hi) + p["b"], 0.0)
    return jnp.dot(x, params["out"]["w"], precision=hi) + params["out"]["b"]


# --------------------------------------- main ------------------------------------

if __name__ == "__main__":
    channels = [4, 8]
    kernel_sizes = [3, 3]
    dense_layers = [32]
    n_classes = 10
    img_size = 16
    batch = 2

    conv_img_size = img_size
    for k in kernel_sizes:
        conv_img_size = math.floor((conv_img_size - (k - 1)) / 2)
    conv_flat_size = channels[-1] * conv_img_size * conv_img_size   # 8*2*2 = 32

    key = jax.random.PRNGKey(0)
    key, xk = jax.random.split(key)
    x = jax.random.normal(xk, (batch, 1, img_size, img_size), jnp.float32)
    params = init_params(key, channels, kernel_sizes, dense_layers,
                         n_classes, conv_flat_size)

    logits = cnn_forward(x, params, kernel_sizes, img_size)
    logits = jax.block_until_ready(logits)

    assert logits.shape == (batch, n_classes)
    assert bool(jnp.all(jnp.isfinite(logits)))

    # Reference at bf16-rounded weights + HIGHEST precision: remaining delta is the
    # in-kernel bf16 activation rounding (f32 accumulation), expected worst-case
    # ~1e-2..3e-2 on O(1) logits.  0.08 gives >=2.5x margin while still catching
    # any Toeplitz-indexing bug (those produce O(1) errors).
    qparams = bf16_roundtrip_weights(params)
    ref = reference_forward(x, qparams, kernel_sizes)
    ref = jax.block_until_ready(ref)
    max_err = float(jnp.max(jnp.abs(logits - ref)))
    assert max_err < 0.08, f"kernel/reference mismatch: max abs err = {max_err}"

    print("KERNEL_OK")
</pallas_src>

<mosaic_0001>
module attributes {stable_mosaic.version = 11 : i64} {
  func.func @kernel(%arg0: i32, %arg1: memref<8x256xf32, #tpu.memory_space<vmem>>, %arg2: memref<256x1024xbf16, #tpu.memory_space<vmem>>, %arg3: memref<1x256xf32, #tpu.memory_space<vmem>>, %arg4: memref<256x128xbf16, #tpu.memory_space<vmem>>, %arg5: memref<1x32xf32, #tpu.memory_space<vmem>>, %arg6: memref<32x32xbf16, #tpu.memory_space<vmem>>, %arg7: memref<1x32xf32, #tpu.memory_space<vmem>>, %arg8: memref<32x10xbf16, #tpu.memory_space<vmem>>, %arg9: memref<1x10xf32, #tpu.memory_space<vmem>>, %arg10: memref<8x10xf32, #tpu.memory_space<vmem>>) attributes {dimension_semantics = [#tpu.dimension_semantics<parallel>], iteration_bounds = array<i64: 1>, scalar_prefetch = 0 : i64, scratch_operands = 0 : i64, tpu.core_type = #tpu.core_type<tc>, window_params = [{transform_indices = @transform_0, window_bounds = array<i64: 8, 256>}, {pipeline_mode = #tpu.pipeline_mode<synchronous>, transform_indices = @transform_1, window_bounds = array<i64: 256, 1024>}, {pipeline_mode = #tpu.pipeline_mode<synchronous>, transform_indices = @transform_2, window_bounds = array<i64: 1, 256>}, {pipeline_mode = #tpu.pipeline_mode<synchronous>, transform_indices = @transform_3, window_bounds = array<i64: 256, 128>}, {pipeline_mode = #tpu.pipeline_mode<synchronous>, transform_indices = @transform_4, window_bounds = array<i64: 1, 32>}, {pipeline_mode = #tpu.pipeline_mode<synchronous>, transform_indices = @transform_5, window_bounds = array<i64: 32, 32>}, {pipeline_mode = #tpu.pipeline_mode<synchronous>, transform_indices = @transform_6, window_bounds = array<i64: 1, 32>}, {pipeline_mode = #tpu.pipeline_mode<synchronous>, transform_indices = @transform_7, window_bounds = array<i64: 32, 10>}, {pipeline_mode = #tpu.pipeline_mode<synchronous>, transform_indices = @transform_8, window_bounds = array<i64: 1, 10>}, {transform_indices = @transform_9, window_bounds = array<i64: 8, 10>}]} {
    %c0 = arith.constant 0 : index
    %c0_0 = arith.constant 0 : index
    %0 = vector.load %arg1[%c0, %c0_0] : memref<8x256xf32, #tpu.memory_space<vmem>>, vector<8x256xf32>
    %1 = arith.truncf %0 : vector<8x256xf32> to vector<8x256xbf16>
    %c0_1 = arith.constant 0 : index
    %c0_2 = arith.constant 0 : index
    %2 = vector.load %arg2[%c0_1, %c0_2] : memref<256x1024xbf16, #tpu.memory_space<vmem>>, vector<256x1024xbf16>
    %cst = arith.constant dense<0.000000e+00> : vector<8x1024xf32>
    %3 = tpu.matmul %1, %2, %cst {dimension_numbers = #tpu.dot_dimension_numbers<[1], [0], [0], [1], [0, 0, 1, 1], [], []>} : vector<8x256xbf16>, vector<256x1024xbf16>, vector<8x1024xf32> -> vector<8x1024xf32>
    %4 = vector.extract_strided_slice %3 {offsets = [0, 0], sizes = [8, 256], strides = [1, 1]} : vector<8x1024xf32> to vector<8x256xf32>
    %5 = vector.extract_strided_slice %3 {offsets = [0, 256], sizes = [8, 256], strides = [1, 1]} : vector<8x1024xf32> to vector<8x256xf32>
    %6 = arith.maximumf %4, %5 : vector<8x256xf32>
    %7 = vector.extract_strided_slice %3 {offsets = [0, 512], sizes = [8, 256], strides = [1, 1]} : vector<8x1024xf32> to vector<8x256xf32>
    %8 = vector.extract_strided_slice %3 {offsets = [0, 768], sizes = [8, 256], strides = [1, 1]} : vector<8x1024xf32> to vector<8x256xf32>
    %9 = arith.maximumf %7, %8 : vector<8x256xf32>
    %10 = arith.maximumf %6, %9 : vector<8x256xf32>
    %c0_3 = arith.constant 0 : index
    %c0_4 = arith.constant 0 : index
    %11 = vector.load %arg3[%c0_3, %c0_4] : memref<1x256xf32, #tpu.memory_space<vmem>>, vector<1x256xf32>
    %12 = vector.broadcast %11 : vector<1x256xf32> to vector<8x256xf32>
    %13 = arith.addf %10, %12 : vector<8x256xf32>
    %cst_5 = arith.constant 0.000000e+00 : f32
    %14 = vector.broadcast %cst_5 : f32 to vector<8x256xf32>
    %15 = arith.maximumf %13, %14 : vector<8x256xf32>
    %16 = arith.truncf %15 : vector<8x256xf32> to vector<8x256xbf16>
    %c0_6 = arith.constant 0 : index
    %c0_7 = arith.constant 0 : index
    %17 = vector.load %arg4[%c0_6, %c0_7] : memref<256x128xbf16, #tpu.memory_space<vmem>>, vector<256x128xbf16>
    %cst_8 = arith.constant dense<0.000000e+00> : vector<8x128xf32>
    %18 = tpu.matmul %16, %17, %cst_8 {dimension_numbers = #tpu.dot_dimension_numbers<[1], [0], [0], [1], [0, 0, 1, 1], [], []>} : vector<8x256xbf16>, vector<256x128xbf16>, vector<8x128xf32> -> vector<8x128xf32>
    %19 = vector.extract_strided_slice %18 {offsets = [0, 0], sizes = [8, 32], strides = [1, 1]} : vector<8x128xf32> to vector<8x32xf32>
    %20 = vector.extract_strided_slice %18 {offsets = [0, 32], sizes = [8, 32], strides = [1, 1]} : vector<8x128xf32> to vector<8x32xf32>
    %21 = arith.maximumf %19, %20 : vector<8x32xf32>
    %22 = vector.extract_strided_slice %18 {offsets = [0, 64], sizes = [8, 32], strides = [1, 1]} : vector<8x128xf32> to vector<8x32xf32>
    %23 = vector.extract_strided_slice %18 {offsets = [0, 96], sizes = [8, 32], strides = [1, 1]} : vector<8x128xf32> to vector<8x32xf32>
    %24 = arith.maximumf %22, %23 : vector<8x32xf32>
    %25 = arith.maximumf %21, %24 : vector<8x32xf32>
    %c0_9 = arith.constant 0 : index
    %c0_10 = arith.constant 0 : index
    %26 = vector.load %arg5[%c0_9, %c0_10] : memref<1x32xf32, #tpu.memory_space<vmem>>, vector<1x32xf32>
    %27 = vector.broadcast %26 : vector<1x32xf32> to vector<8x32xf32>
    %28 = arith.addf %25, %27 : vector<8x32xf32>
    %cst_11 = arith.constant 0.000000e+00 : f32
    %29 = vector.broadcast %cst_11 : f32 to vector<8x32xf32>
    %30 = arith.maximumf %28, %29 : vector<8x32xf32>
    %31 = arith.truncf %30 : vector<8x32xf32> to vector<8x32xbf16>
    %c0_12 = arith.constant 0 : index
    %c0_13 = arith.constant 0 : index
    %32 = vector.load %arg6[%c0_12, %c0_13] : memref<32x32xbf16, #tpu.memory_space<vmem>>, vector<32x32xbf16>
    %cst_14 = arith.constant dense<0.000000e+00> : vector<8x32xf32>
    %33 = tpu.matmul %31, %32, %cst_14 {dimension_numbers = #tpu.dot_dimension_numbers<[1], [0], [0], [1], [0, 0, 1, 1], [], []>} : vector<8x32xbf16>, vector<32x32xbf16>, vector<8x32xf32> -> vector<8x32xf32>
    %c0_15 = arith.constant 0 : index
    %c0_16 = arith.constant 0 : index
    %34 = vector.load %arg7[%c0_15, %c0_16] : memref<1x32xf32, #tpu.memory_space<vmem>>, vector<1x32xf32>
    %35 = vector.broadcast %34 : vector<1x32xf32> to vector<8x32xf32>
    %36 = arith.addf %33, %35 : vector<8x32xf32>
    %cst_17 = arith.constant 0.000000e+00 : f32
    %37 = vector.broadcast %cst_17 : f32 to vector<8x32xf32>
    %38 = arith.maximumf %36, %37 : vector<8x32xf32>
    %39 = arith.truncf %38 : vector<8x32xf32> to vector<8x32xbf16>
    %c0_18 = arith.constant 0 : index
    %c0_19 = arith.constant 0 : index
    %40 = vector.load %arg8[%c0_18, %c0_19] : memref<32x10xbf16, #tpu.memory_space<vmem>>, vector<32x10xbf16>
    %cst_20 = arith.constant dense<0.000000e+00> : vector<8x10xf32>
    %41 = tpu.matmul %39, %40, %cst_20 {dimension_numbers = #tpu.dot_dimension_numbers<[1], [0], [0], [1], [0, 0, 1, 1], [], []>} : vector<8x32xbf16>, vector<32x10xbf16>, vector<8x10xf32> -> vector<8x10xf32>
    %c0_21 = arith.constant 0 : index
    %c0_22 = arith.constant 0 : index
    %42 = vector.load %arg9[%c0_21, %c0_22] : memref<1x10xf32, #tpu.memory_space<vmem>>, vector<1x10xf32>
    %43 = vector.broadcast %42 : vector<1x10xf32> to vector<8x10xf32>
    %44 = arith.addf %41, %43 : vector<8x10xf32>
    %c0_23 = arith.constant 0 : index
    %c0_24 = arith.constant 0 : index
    %45 = vector.load %arg10[%c0_23, %c0_24] : memref<8x10xf32, #tpu.memory_space<vmem>>, vector<8x10xf32>
    tpu.vector_store %arg10[%c0_23, %c0_24], %44 {strides = array<i32>} : memref<8x10xf32, #tpu.memory_space<vmem>>, vector<8x10xf32>,
    return
  }
  func.func @transform_0(%arg0: i32) -> (i32, i32) {
    %c0_i32 = arith.constant 0 : i32
    %c0_i32_0 = arith.constant 0 : i32
    return %arg0, %c0_i32 : i32, i32
  }
  func.func @transform_1(%arg0: i32) -> (i32, i32) {
    %c0_i32 = arith.constant 0 : i32
    %c0_i32_0 = arith.constant 0 : i32
    %c0_i32_1 = arith.constant 0 : i32
    return %c0_i32, %c0_i32_0 : i32, i32
  }
  func.func @transform_2(%arg0: i32) -> (i32, i32) {
    %c0_i32 = arith.constant 0 : i32
    %c0_i32_0 = arith.constant 0 : i32
    %c0_i32_1 = arith.constant 0 : i32
    return %c0_i32, %c0_i32_0 : i32, i32
  }
  func.func @transform_3(%arg0: i32) -> (i32, i32) {
    %c0_i32 = arith.constant 0 : i32
    %c0_i32_0 = arith.constant 0 : i32
    %c0_i32_1 = arith.constant 0 : i32
    return %c0_i32, %c0_i32_0 : i32, i32
  }
  func.func @transform_4(%arg0: i32) -> (i32, i32) {
    %c0_i32 = arith.constant 0 : i32
    %c0_i32_0 = arith.constant 0 : i32
    %c0_i32_1 = arith.constant 0 : i32
    return %c0_i32, %c0_i32_0 : i32, i32
  }
  func.func @transform_5(%arg0: i32) -> (i32, i32) {
    %c0_i32 = arith.constant 0 : i32
    %c0_i32_0 = arith.constant 0 : i32
    %c0_i32_1 = arith.constant 0 : i32
    return %c0_i32, %c0_i32_0 : i32, i32
  }
  func.func @transform_6(%arg0: i32) -> (i32, i32) {
    %c0_i32 = arith.constant 0 : i32
    %c0_i32_0 = arith.constant 0 : i32
    %c0_i32_1 = arith.constant 0 : i32
    return %c0_i32, %c0_i32_0 : i32, i32
  }
  func.func @transform_7(%arg0: i32) -> (i32, i32) {
    %c0_i32 = arith.constant 0 : i32
    %c0_i32_0 = arith.constant 0 : i32
    %c0_i32_1 = arith.constant 0 : i32
    return %c0_i32, %c0_i32_0 : i32, i32
  }
  func.func @transform_8(%arg0: i32) -> (i32, i32) {
    %c0_i32 = arith.constant 0 : i32
    %c0_i32_0 = arith.constant 0 : i32
    %c0_i32_1 = arith.constant 0 : i32
    return %c0_i32, %c0_i32_0 : i32, i32
  }
  func.func @transform_9(%arg0: i32) -> (i32, i32) {
    %c0_i32 = arith.constant 0 : i32
    %c0_i32_0 = arith.constant 0 : i32
    return %arg0, %c0_i32 : i32, i32
  }
}

</mosaic_0001>

<bundles_post_ra>
// kernel: tpu_custom_call.1
= control target key start
LH: loop header
LB: loop body
LE: loop exit
PB: predicated region body
PF: predicated region fallthrough
CT: control target
= control target key end

     0   :  { %14 = vsyncpa [#allocation3], 0  ;;  %s1805_s0 = inlined_call_operand.vmem [shape: f32[8,256], index: 0, kind: input, shape index: {}]   ;;  %s1806_s1 = inlined_call_operand.hbm [shape: bf16[256,1024], index: 1, kind: input, shape index: {}]   ;;  %s1807_s2 = inlined_call_operand.hbm [shape: f32[1,256], index: 2, kind: input, shape index: {}]   ;;  %s1808_s3 = inlined_call_operand.hbm [shape: bf16[256,128], index: 3, kind: input, shape index: {}]   ;;  %s1809_s4 = inlined_call_operand.vmem [shape: f32[1,32], index: 4, kind: input, shape index: {}]   ;;  %s1810_s5 = inlined_call_operand.vmem [shape: bf16[32,32], index: 5, kind: input, shape index: {}]   ;;  %s1811_s6 = inlined_call_operand.vmem [shape: f32[1,32], index: 6, kind: input, shape index: {}]   ;;  %s1812_s7 = inlined_call_operand.vmem [shape: bf16[32,10], index: 7, kind: input, shape index: {}]   ;;  %s1813_s8 = inlined_call_operand.vmem [shape: f32[1,10], index: 8, kind: input, shape index: {}]   ;;  %s1814_s9 = inlined_call_operand.hbm [shape: f32[8,10], index: 9, kind: output, shape index: {}]  }
   0x1   :  { %15 = vsyncpa [#allocation6], 0 }
   0x2   :  { %16 = vsyncpa [#allocation4], 0  ;;  %s1688_s30 = smov [#allocation5]   ;;  %s1689_s11 = smov [#allocation2]  }
   0x3   :  { %s37_s10 = sshll.u32 %s1688_s30, 4  ;;  %s24_s12 = sshll.u32 %s1689_s11, 4  ;;  %s38_s10 = int_to_ptr.vmem [resolvable:$true] %s37_s10  ;;  %s25_s12 = int_to_ptr.vmem [resolvable:$true] %s24_s12 }
   0x4   :  { %s1610_s13 = scalar_lea.vmem %s38_s10, 32  ;;  %p1615_p1 = scmp.lt.s32.totalorder %s38_s10, %s38_s10 }
   0x5   :  { %p1611_p0 = scmp.ne.s32.totalorder %s38_s10, %s1610_s13  ;;  %p1616_p2 = scmp.lt.s32.totalorder %s1610_s13, %s1610_s13 }
   0x7   :  { %p1617_p3 = por %p1616_p2, %p1615_p1 }
   0x9   :  { %p1618_p4 = pnand %p1617_p3, %p1611_p0 }
   0xb   :  { %1621 = shalt.err (!%p1618_p4)
}
   0xc   :  { %40 = dma.hbm_to_vmem [thread:$0]  %s1807_s2, 32, %s38_s10, [#allocation6]  }
   0xd   :  { %s1630_s16 = scalar_lea.vmem %s25_s12, 16384  ;;  %p1635_p6 = scmp.lt.s32.totalorder %s25_s12, %s25_s12 }
   0xe   :  { %p1631_p5 = scmp.ne.s32.totalorder %s25_s12, %s1630_s16  ;;  %p1636_p7 = scmp.lt.s32.totalorder %s1630_s16, %s1630_s16 }
  0x10   :  { %p1637_p8 = por %p1636_p7, %p1635_p6 }
  0x12   :  { %p1638_p9 = pnand %p1637_p8, %p1631_p5 }
  0x14   :  { %1641 = shalt.err (!%p1638_p9)
}
  0x15   :  { %s1690_s17 = smov 512   ;;  %s1691_s18 = smov 32  }
  0x16   :  { %30 = dma.hbm_to_vmem [thread:$0]  %s1806_s1, 16384, %s25_s12, [#allocation3], %s1690_s17, %s1690_s17, %s1691_s18  }
  0x17   :  { %s1692_s21 = smov [#allocation7]  }
  0x18   :  { %s46_s22 = sshll.u32 %s1692_s21, 4  ;;  %s47_s22 = int_to_ptr.vmem [resolvable:$true] %s46_s22 }
  0x19   :  { %s1650_s23 = scalar_lea.vmem %s47_s22, 2048  ;;  %p1655_p11 = scmp.lt.s32.totalorder %s47_s22, %s47_s22 }
  0x1a   :  { %p1651_p10 = scmp.ne.s32.totalorder %s47_s22, %s1650_s23  ;;  %p1656_p12 = scmp.lt.s32.totalorder %s1650_s23, %s1650_s23 }
  0x1c   :  { %p1657_p13 = por %p1656_p12, %p1655_p11 }
  0x1e   :  { %p1658_p0 = pnand %p1657_p13, %p1651_p10 }
  0x20   :  { %1661 = shalt.err (!%p1658_p0)
}
  0x21   :  { %s1693_s2 = smov 64   ;;  %s1694_s24 = smov 4  }
  0x22   :  { %52 = dma.hbm_to_vmem [thread:$0]  %s1808_s3, 2048, %s47_s22, [#allocation6], %s1693_s2, %s1693_s2, %s1694_s24  }
  0x23   :  { %1682 = dma.done.wait [#allocation3], 16384  }
  0x24   :  { %1683 = vsyncadd [#allocation3], 4294950912 }
  0x25   :  { %1684 = dma.done.wait [#allocation6], 2080  }
  0x26   :  { %1685 = vsyncadd [#allocation6], 4294965216  ;;  %v133_v0 = vld [vmem:[#allocation2 + $0x1c0] sm:$0xff]  ;;  %v134_v2 = vld [vmem:[#allocation2 + $0x1c8] sm:$0xff]  ;;  %vm1697_vm0 = vmmov 0   ;;  %vm1244_vm1 = vcmask 261120  }
  0x27   :  { %v137_v1 = vld [vmem:[#allocation2 + $0x1e0] sm:$0xff]  ;;  %v138_v4 = vld [vmem:[#allocation2 + $0x1e8] sm:$0xff]  ;;  %s1698_s20 = smov [#allocation8]   ;;  %vm1356_vm2 = vcmask 80896  }
  0x28   :  { %v1431_v3 = vcombine.high %v133_v0, %v137_v1  ;;  %v1430_v5 = vcombine.low %v133_v0, %v137_v1  ;;  %v125_v6 = vld [vmem:[#allocation2 + $0x180] sm:$0xff]  ;;  %v1433_v8 = vcombine.high %v134_v2, %v138_v4  ;;  %v1432_v9 = vcombine.low %v134_v2, %v138_v4  ;;  %v126_v11 = vld [vmem:[#allocation2 + $0x188] sm:$0xff] }
  0x29   :  { %v129_v7 = vld [vmem:[#allocation2 + $0x1a0] sm:$0xff]  ;;  %v130_v12 = vld [vmem:[#allocation2 + $0x1a8] sm:$0xff] }
  0x2a   :  { %v1423_v10 = vcombine.high %v125_v6, %v129_v7  ;;  %v117_v13 = vld [vmem:[#allocation2 + $0x140] sm:$0xff]  ;;  %845 = vmatprep.subr.bf16.mxu0 %v1431_v3  ;;  %v1425_v14 = vcombine.high %v126_v11, %v130_v12  ;;  %v118_v16 = vld [vmem:[#allocation2 + $0x148] sm:$0xff]  ;;  %886 = vmatprep.subr.bf16.mxu1 %v1433_v8  ;;  %v1422_v18 = vcombine.low %v125_v6, %v129_v7 }
  0x2b   :  { %v121_v15 = vld [vmem:[#allocation2 + $0x160] sm:$0xff]  ;;  %v122_v17 = vld [vmem:[#allocation2 + $0x168] sm:$0xff]  ;;  %846 = vmatpush1.bf16.msra.mxu0 %v1430_v5  ;;  %887 = vmatpush1.bf16.msra.mxu1 %v1432_v9  ;;  %v1424_v19 = vcombine.low %v126_v11, %v130_v12 }
  0x2c   :  { %847 = vmatprep.subr.bf16.mxu0 %v1423_v10  ;;  %v1415_v20 = vcombine.high %v117_v13, %v121_v15  ;;  %888 = vmatprep.subr.bf16.mxu1 %v1425_v14  ;;  %v1417_v21 = vcombine.high %v118_v16, %v122_v17  ;;  %v109_v22 = vld [vmem:[#allocation2 + $0x100] sm:$0xff]  ;;  %v110_v24 = vld [vmem:[#allocation2 + $0x108] sm:$0xff]  ;;  %v1414_v26 = vcombine.low %v117_v13, %v121_v15 }
  0x2d   :  { %v113_v23 = vld [vmem:[#allocation2 + $0x120] sm:$0xff]  ;;  %v114_v25 = vld [vmem:[#allocation2 + $0x128] sm:$0xff]  ;;  %v1416_v27 = vcombine.low %v118_v16, %v122_v17 }
  0x2e   :  { %v1407_v28 = vcombine.high %v109_v22, %v113_v23  ;;  %v1409_v29 = vcombine.high %v110_v24, %v114_v25  ;;  %v101_v30 = vld [vmem:[#allocation2 + $0xc0] sm:$0xff]  ;;  %v102_v32 = vld [vmem:[#allocation2 + $0xc8] sm:$0xff]  ;;  %v1406_v34 = vcombine.low %v109_v22, %v113_v23  ;;  %v1408_v35 = vcombine.low %v110_v24, %v114_v25 }
  0x2f   :  { %848 = vmatpush1.bf16.msra.mxu0 %v1422_v18  ;;  %889 = vmatpush1.bf16.msra.mxu1 %v1424_v19  ;;  %v105_v31 = vld [vmem:[#allocation2 + $0xe0] sm:$0xff]  ;;  %v106_v33 = vld [vmem:[#allocation2 + $0xe8] sm:$0xff] }
  0x30   :  { %849 = vmatprep.subr.bf16.mxu0 %v1415_v20  ;;  %890 = vmatprep.subr.bf16.mxu1 %v1417_v21  ;;  %v1399_v36 = vcombine.high %v101_v30, %v105_v31  ;;  %v1401_v37 = vcombine.high %v102_v32, %v106_v33  ;;  %v93_v38 = vld [vmem:[#allocation2 + $0x80] sm:$0xff]  ;;  %v94_v40 = vld [vmem:[#allocation2 + $0x88] sm:$0xff]  ;;  %v1398_v42 = vcombine.low %v101_v30, %v105_v31 }
  0x31   :  { %v97_v39 = vld [vmem:[#allocation2 + $0xa0] sm:$0xff]  ;;  %v98_v41 = vld [vmem:[#allocation2 + $0xa8] sm:$0xff]  ;;  %v1400_v43 = vcombine.low %v102_v32, %v106_v33 }
  0x32   :  { %v1391_v44 = vcombine.high %v93_v38, %v97_v39  ;;  %v1393_v45 = vcombine.high %v94_v40, %v98_v41  ;;  %v85_v46 = vld [vmem:[#allocation2 + $0x40] sm:$0xff]  ;;  %v86_v48 = vld [vmem:[#allocation2 + $0x48] sm:$0xff]  ;;  %v1390_v50 = vcombine.low %v93_v38, %v97_v39  ;;  %v1392_v51 = vcombine.low %v94_v40, %v98_v41 }
  0x33   :  { %850 = vmatpush1.bf16.msra.mxu0 %v1414_v26  ;;  %891 = vmatpush1.bf16.msra.mxu1 %v1416_v27  ;;  %v89_v47 = vld [vmem:[#allocation2 + $0x60] sm:$0xff]  ;;  %v90_v49 = vld [vmem:[#allocation2 + $0x68] sm:$0xff] }
  0x34   :  { %851 = vmatprep.subr.bf16.mxu0 %v1407_v28  ;;  %892 = vmatprep.subr.bf16.mxu1 %v1409_v29  ;;  %v1383_v52 = vcombine.high %v85_v46, %v89_v47  ;;  %v74_v53 = vld [vmem:[%s1805_s0 + $0x8] sm:$0xff]  ;;  %v1385_v54 = vcombine.high %v86_v48, %v90_v49  ;;  %v77_v55 = vld [vmem:[#allocation2] sm:$0xff]  ;;  %v1382_v60 = vcombine.low %v85_v46, %v89_v47 }
  0x35   :  { %v81_v56 = vld [vmem:[#allocation2 + $0x20] sm:$0xff]  ;;  %v1763_v57 = vpack.c.bf16 %v74_v53, %v74_v53  ;;  %v78_v58 = vld [vmem:[#allocation2 + $0x8] sm:$0xff]  ;;  %v1384_v61 = vcombine.low %v86_v48, %v90_v49 }
  0x36   :  { %v82_v59 = vld [vmem:[#allocation2 + $0x28] sm:$0xff]  ;;  %v1375_v62 = vcombine.high %v77_v55, %v81_v56  ;;  %v197_v0 = vld [vmem:[#allocation2 + $0x3c0] sm:$0xff]  ;;  %v1374_v4 = vcombine.low %v77_v55, %v81_v56 }
  0x37   :  { %852 = vmatpush1.bf16.msra.mxu0 %v1406_v34  ;;  %893 = vmatpush1.bf16.msra.mxu1 %v1408_v35  ;;  %v1377_v63 = vcombine.high %v78_v58, %v82_v59  ;;  %v201_v1 = vld [vmem:[#allocation2 + $0x3e0] sm:$0xff]  ;;  %v198_v2 = vld [vmem:[#allocation2 + $0x3c8] sm:$0xff]  ;;  %v1376_v5 = vcombine.low %v78_v58, %v82_v59 }
  0x38   :  { %853 = vmatprep.subr.bf16.mxu0 %v1399_v36  ;;  %894 = vmatprep.subr.bf16.mxu1 %v1401_v37  ;;  %v202_v3 = vld [vmem:[#allocation2 + $0x3e8] sm:$0xff]  ;;  %v1495_v6 = vcombine.high %v197_v0, %v201_v1  ;;  %v189_v8 = vld [vmem:[#allocation2 + $0x380] sm:$0xff]  ;;  %v1494_v12 = vcombine.low %v197_v0, %v201_v1  ;;  %v135_v1 = vld [vmem:[#allocation2 + $0x1d0] sm:$0xff] }
  0x39   :  { %877 = vmatprep.mubr.bf16.mxu0 %v1763_v57  ;;  %918 = vmatprep.mubr.bf16.mxu1 %v1763_v57  ;;  %v1497_v7 = vcombine.high %v198_v2, %v202_v3  ;;  %v193_v9 = vld [vmem:[#allocation2 + $0x3a0] sm:$0xff]  ;;  %v190_v10 = vld [vmem:[#allocation2 + $0x388] sm:$0xff]  ;;  %v1496_v13 = vcombine.low %v198_v2, %v202_v3  ;;  %v139_v2 = vld [vmem:[#allocation2 + $0x1f0] sm:$0xff] }
  0x3a   :  { %v194_v11 = vld [vmem:[#allocation2 + $0x3a8] sm:$0xff]  ;;  %v1487_v14 = vcombine.high %v189_v8, %v193_v9  ;;  %v181_v16 = vld [vmem:[#allocation2 + $0x340] sm:$0xff]  ;;  %v1486_v20 = vcombine.low %v189_v8, %v193_v9  ;;  %v136_v3 = vld [vmem:[#allocation2 + $0x1d8] sm:$0xff]  ;;  %v1435_v8 = vcombine.high %v135_v1, %v139_v2 }
  0x3b   :  { %854 = vmatpush1.bf16.msra.mxu0 %v1398_v42  ;;  %895 = vmatpush1.bf16.msra.mxu1 %v1400_v43  ;;  %v1489_v15 = vcombine.high %v190_v10, %v194_v11  ;;  %v185_v17 = vld [vmem:[#allocation2 + $0x360] sm:$0xff]  ;;  %v182_v18 = vld [vmem:[#allocation2 + $0x348] sm:$0xff]  ;;  %v1488_v21 = vcombine.low %v190_v10, %v194_v11  ;;  %v127_v10 = vld [vmem:[#allocation2 + $0x190] sm:$0xff] }
  0x3c   :  { %855 = vmatprep.subr.bf16.mxu0 %v1391_v44  ;;  %896 = vmatprep.subr.bf16.mxu1 %v1393_v45  ;;  %v186_v19 = vld [vmem:[#allocation2 + $0x368] sm:$0xff]  ;;  %v1479_v22 = vcombine.high %v181_v16, %v185_v17  ;;  %v173_v24 = vld [vmem:[#allocation2 + $0x300] sm:$0xff]  ;;  %v1478_v28 = vcombine.low %v181_v16, %v185_v17  ;;  %v131_v11 = vld [vmem:[#allocation2 + $0x1b0] sm:$0xff] }
  0x3d   :  { %v1481_v23 = vcombine.high %v182_v18, %v186_v19  ;;  %v177_v25 = vld [vmem:[#allocation2 + $0x320] sm:$0xff]  ;;  %v174_v26 = vld [vmem:[#allocation2 + $0x308] sm:$0xff]  ;;  %v1480_v29 = vcombine.low %v182_v18, %v186_v19  ;;  %v1427_v17 = vcombine.high %v127_v10, %v131_v11  ;;  %v119_v19 = vld [vmem:[#allocation2 + $0x150] sm:$0xff] }
  0x3e   :  { %v178_v27 = vld [vmem:[#allocation2 + $0x328] sm:$0xff]  ;;  %v1471_v30 = vcombine.high %v173_v24, %v177_v25  ;;  %v165_v32 = vld [vmem:[#allocation2 + $0x2c0] sm:$0xff]  ;;  %v1470_v36 = vcombine.low %v173_v24, %v177_v25 }
  0x3f   :  { %856 = vmatpush1.bf16.msra.mxu0 %v1390_v50  ;;  %897 = vmatpush1.bf16.msra.mxu1 %v1392_v51  ;;  %v1473_v31 = vcombine.high %v174_v26, %v178_v27  ;;  %v169_v33 = vld [vmem:[#allocation2 + $0x2e0] sm:$0xff]  ;;  %v166_v34 = vld [vmem:[#allocation2 + $0x2c8] sm:$0xff]  ;;  %v1472_v39 = vcombine.low %v174_v26, %v178_v27  ;;  %v111_v27 = vld [vmem:[#allocation2 + $0x110] sm:$0xff] }
  0x40   :  { %857 = vmatprep.subr.bf16.mxu0 %v1383_v52  ;;  %898 = vmatprep.subr.bf16.mxu1 %v1385_v54  ;;  %v170_v35 = vld [vmem:[#allocation2 + $0x2e8] sm:$0xff]  ;;  %v157_v37 = vld [vmem:[#allocation2 + $0x280] sm:$0xff]  ;;  %v1463_v40 = vcombine.high %v165_v32, %v169_v33  ;;  %v1462_v44 = vcombine.low %v165_v32, %v169_v33 }
  0x41   :  { %v161_v38 = vld [vmem:[#allocation2 + $0x2a0] sm:$0xff]  ;;  %v158_v41 = vld [vmem:[#allocation2 + $0x288] sm:$0xff]  ;;  %v1465_v43 = vcombine.high %v166_v34, %v170_v35  ;;  %v1464_v47 = vcombine.low %v166_v34, %v170_v35  ;;  %v103_v35 = vld [vmem:[#allocation2 + $0xd0] sm:$0xff] }
  0x42   :  { %v162_v42 = vld [vmem:[#allocation2 + $0x2a8] sm:$0xff]  ;;  %v149_v45 = vld [vmem:[#allocation2 + $0x240] sm:$0xff]  ;;  %v1455_v48 = vcombine.high %v157_v37, %v161_v38  ;;  %v1454_v52 = vcombine.low %v157_v37, %v161_v38  ;;  %v104_v37 = vld [vmem:[#allocation2 + $0xd8] sm:$0xff] }
  0x43   :  { %858 = vmatpush1.bf16.msra.mxu0 %v1382_v60  ;;  %899 = vmatpush1.bf16.msra.mxu1 %v1384_v61  ;;  %v153_v46 = vld [vmem:[#allocation2 + $0x260] sm:$0xff]  ;;  %v150_v49 = vld [vmem:[#allocation2 + $0x248] sm:$0xff]  ;;  %v1457_v51 = vcombine.high %v158_v41, %v162_v42  ;;  %v1456_v55 = vcombine.low %v158_v41, %v162_v42  ;;  %v108_v38 = vld [vmem:[#allocation2 + $0xf8] sm:$0xff] }
  0x44   :  { %859 = vmatprep.subr.bf16.mxu0 %v1375_v62  ;;  %900 = vmatprep.subr.bf16.mxu1 %v1377_v63  ;;  %v154_v50 = vld [vmem:[#allocation2 + $0x268] sm:$0xff]  ;;  %v141_v53 = vld [vmem:[#allocation2 + $0x200] sm:$0xff]  ;;  %v1447_v56 = vcombine.high %v149_v45, %v153_v46  ;;  %v1446_v61 = vcombine.low %v149_v45, %v153_v46  ;;  %v95_v42 = vld [vmem:[#allocation2 + $0x90] sm:$0xff] }
  0x45   :  { %v145_v54 = vld [vmem:[#allocation2 + $0x220] sm:$0xff]  ;;  %v142_v58 = vld [vmem:[#allocation2 + $0x208] sm:$0xff]  ;;  %v1449_v60 = vcombine.high %v150_v49, %v154_v50  ;;  %v1448_v62 = vcombine.low %v150_v49, %v154_v50  ;;  %v100_v45 = vld [vmem:[#allocation2 + $0xb8] sm:$0xff] }
  0x46   :  { %v146_v59 = vld [vmem:[#allocation2 + $0x228] sm:$0xff]  ;;  %v1439_v63 = vcombine.high %v141_v53, %v145_v54  ;;  %v87_v50 = vld [vmem:[#allocation2 + $0x50] sm:$0xff] }
  0x47   :  { %860 = vmatpush1.bf16.msra.mxu0 %v1374_v4  ;;  %901 = vmatpush1.bf16.msra.mxu1 %v1376_v5  ;;  %v1441_v0 = vcombine.high %v142_v58, %v146_v59  ;;  %v140_v4 = vld [vmem:[#allocation2 + $0x1f8] sm:$0xff]  ;;  %v1438_v5 = vcombine.low %v141_v53, %v145_v54 }
  0x48   :  { %861 = vmatprep.subr.bf16.mxu0 %v1495_v6  ;;  %902 = vmatprep.subr.bf16.mxu1 %v1497_v7  ;;  %v73_v6 = vld [vmem:[%s1805_s0] sm:$0xff]  ;;  %v1440_v7 = vcombine.low %v142_v58, %v146_v59  ;;  %v1437_v9 = vcombine.high %v136_v3, %v140_v4  ;;  %v1436_v16 = vcombine.low %v136_v3, %v140_v4  ;;  %v92_v53 = vld [vmem:[#allocation2 + $0x78] sm:$0xff]  ;;  %v79_v59 = vld [vmem:[#allocation2 + $0x10] sm:$0xff]  ;;  %s1696_s0 = smov 96  }
  0x49   :  { %v199_v3 = vld [vmem:[#allocation2 + $0x3d0] sm:$0xff] }
  0x4a   :  { %v203_v4 = vld [vmem:[#allocation2 + $0x3f0] sm:$0xff] }
  0x4b   :  { %862 = vmatpush2.bf16.msra.mxu0 %v1494_v12  ;;  %903 = vmatpush2.bf16.msra.mxu1 %v1496_v13  ;;  %v1770_v12 = vpack.c.bf16 %v73_v6, %v73_v6  ;;  %v128_v13 = vld [vmem:[#allocation2 + $0x198] sm:$0xff] }
  0x4c   :  { %863 = vmatprep.subr.bf16.mxu0 %v1487_v14  ;;  %904 = vmatprep.subr.bf16.mxu1 %v1489_v15  ;;  %v132_v14 = vld [vmem:[#allocation2 + $0x1b8] sm:$0xff]  ;;  %v1434_v15 = vcombine.low %v135_v1, %v139_v2 }
  0x4d   :  { %v1429_v18 = vcombine.high %v128_v13, %v132_v14  ;;  %v1428_v24 = vcombine.low %v128_v13, %v132_v14  ;;  %v204_v6 = vld [vmem:[#allocation2 + $0x3f8] sm:$0xff]  ;;  %v195_v13 = vld [vmem:[#allocation2 + $0x3b0] sm:$0xff] }
  0x4e   :  { %v192_v14 = vld [vmem:[#allocation2 + $0x398] sm:$0xff] }
  0x4f   :  { %864 = vmatpush2.bf16.msra.mxu0 %v1486_v20  ;;  %905 = vmatpush2.bf16.msra.mxu1 %v1488_v21  ;;  %v123_v20 = vld [vmem:[#allocation2 + $0x170] sm:$0xff]  ;;  %v120_v21 = vld [vmem:[#allocation2 + $0x158] sm:$0xff] }
  0x50   :  { %865 = vmatprep.subr.bf16.mxu0 %v1479_v22  ;;  %906 = vmatprep.subr.bf16.mxu1 %v1481_v23  ;;  %v124_v22 = vld [vmem:[#allocation2 + $0x178] sm:$0xff]  ;;  %v1426_v23 = vcombine.low %v127_v10, %v131_v11  ;;  %v1419_v25 = vcombine.high %v119_v19, %v123_v20  ;;  %v191_v11 = vld [vmem:[#allocation2 + $0x390] sm:$0xff] }
  0x51   :  { %v1421_v26 = vcombine.high %v120_v21, %v124_v22  ;;  %v1420_v32 = vcombine.low %v120_v21, %v124_v22  ;;  %v187_v21 = vld [vmem:[#allocation2 + $0x370] sm:$0xff]  ;;  %v184_v22 = vld [vmem:[#allocation2 + $0x358] sm:$0xff] }
  0x53   :  { %866 = vmatpush2.bf16.msra.mxu0 %v1478_v28  ;;  %907 = vmatpush2.bf16.msra.mxu1 %v1480_v29  ;;  %v115_v28 = vld [vmem:[#allocation2 + $0x130] sm:$0xff]  ;;  %v112_v29 = vld [vmem:[#allocation2 + $0x118] sm:$0xff] }
  0x54   :  { %867 = vmatprep.subr.bf16.mxu0 %v1471_v30  ;;  %908 = vmatprep.subr.bf16.mxu1 %v1473_v31  ;;  %v116_v30 = vld [vmem:[#allocation2 + $0x138] sm:$0xff]  ;;  %v1418_v31 = vcombine.low %v119_v19, %v123_v20  ;;  %v1411_v33 = vcombine.high %v111_v27, %v115_v28  ;;  %v183_v20 = vld [vmem:[#allocation2 + $0x350] sm:$0xff] }
  0x55   :  { %v1413_v34 = vcombine.high %v112_v29, %v116_v30 }
  0x57   :  { %868 = vmatpush2.bf16.msra.mxu0 %v1470_v36  ;;  %909 = vmatpush2.bf16.msra.mxu1 %v1472_v39  ;;  %v107_v36 = vld [vmem:[#allocation2 + $0xf0] sm:$0xff]  ;;  %v1410_v39 = vcombine.low %v111_v27, %v115_v28 }
  0x58   :  { %869 = vmatprep.subr.bf16.mxu0 %v1463_v40  ;;  %910 = vmatprep.subr.bf16.mxu1 %v1465_v43  ;;  %v1412_v40 = vcombine.low %v112_v29, %v116_v30  ;;  %v1403_v41 = vcombine.high %v103_v35, %v107_v36  ;;  %v99_v43 = vld [vmem:[#allocation2 + $0xb0] sm:$0xff]  ;;  %v1402_v46 = vcombine.low %v103_v35, %v107_v36  ;;  %v176_v30 = vld [vmem:[#allocation2 + $0x318] sm:$0xff] }
  0x59   :  { %v1394_v54 = vcombine.low %v95_v42, %v99_v43  ;;  %v175_v28 = vld [vmem:[#allocation2 + $0x310] sm:$0xff] }
  0x5a   :  { %v179_v29 = vld [vmem:[#allocation2 + $0x330] sm:$0xff] }
  0x5b   :  { %870 = vmatpush2.bf16.msra.mxu0 %v1462_v44  ;;  %911 = vmatpush2.bf16.msra.mxu1 %v1464_v47  ;;  %v96_v44 = vld [vmem:[#allocation2 + $0x98] sm:$0xff]  ;;  %v1404_v47 = vcombine.low %v104_v37, %v108_v38  ;;  %v167_v36 = vld [vmem:[#allocation2 + $0x2d0] sm:$0xff] }
  0x5c   :  { %871 = vmatprep.subr.bf16.mxu0 %v1455_v48  ;;  %912 = vmatprep.subr.bf16.mxu1 %v1457_v51  ;;  %v1395_v48 = vcombine.high %v95_v42, %v99_v43  ;;  %v1397_v49 = vcombine.high %v96_v44, %v100_v45  ;;  %v91_v51 = vld [vmem:[#allocation2 + $0x70] sm:$0xff] }
  0x5d   :  { %v159_v43 = vld [vmem:[#allocation2 + $0x290] sm:$0xff] }
  0x5f   :  { %872 = vmatpush2.bf16.msra.mxu0 %v1454_v52  ;;  %913 = vmatpush2.bf16.msra.mxu1 %v1456_v55  ;;  %v88_v52 = vld [vmem:[#allocation2 + $0x58] sm:$0xff]  ;;  %v1396_v55 = vcombine.low %v96_v44, %v100_v45  ;;  %v163_v44 = vld [vmem:[#allocation2 + $0x2b0] sm:$0xff] }
  0x60   :  { %873 = vmatprep.subr.bf16.mxu0 %v1447_v56  ;;  %914 = vmatprep.subr.bf16.mxu1 %v1449_v60  ;;  %v1387_v56 = vcombine.high %v87_v50, %v91_v51  ;;  %v1389_v58 = vcombine.high %v88_v52, %v92_v53  ;;  %v83_v60 = vld [vmem:[#allocation2 + $0x30] sm:$0xff]  ;;  %v160_v45 = vld [vmem:[#allocation2 + $0x298] sm:$0xff] }
  0x61   :  { %v1379_v1 = vcombine.high %v79_v59, %v83_v60 }
  0x63   :  { %874 = vmatpush2.bf16.msra.mxu0 %v1446_v61  ;;  %915 = vmatpush2.bf16.msra.mxu1 %v1448_v62  ;;  %v80_v61 = vld [vmem:[#allocation2 + $0x18] sm:$0xff] }
  0x64   :  { %875 = vmatprep.subr.bf16.mxu0 %v1439_v63  ;;  %916 = vmatprep.subr.bf16.mxu1 %v1441_v0  ;;  %v84_v62 = vld [vmem:[#allocation2 + $0x38] sm:$0xff]  ;;  %v1386_v63 = vcombine.low %v87_v50, %v91_v51  ;;  %v1388_v0 = vcombine.low %v88_v52, %v92_v53  ;;  %v151_v51 = vld [vmem:[#allocation2 + $0x250] sm:$0xff] }
  0x65   :  { %v1381_v2 = vcombine.high %v80_v61, %v84_v62  ;;  %v155_v52 = vld [vmem:[#allocation2 + $0x270] sm:$0xff]  ;;  %v152_v53 = vld [vmem:[#allocation2 + $0x258] sm:$0xff] }
  0x67   :  { %876 = vmatpush2.bf16.msra.mxu0 %v1438_v5  ;;  %917 = vmatpush2.bf16.msra.mxu1 %v1440_v7  ;;  %v200_v5 = vld [vmem:[#allocation2 + $0x3d8] sm:$0xff]  ;;  %v1378_v7 = vcombine.low %v79_v59, %v83_v60  ;;  %v143_v60 = vld [vmem:[#allocation2 + $0x210] sm:$0xff] }
  0x68   :  { %927 = vmatprep.subr.bf16.mxu0 %v1435_v8  ;;  %968 = vmatprep.subr.bf16.mxu1 %v1437_v9  ;;  %v1380_v8 = vcombine.low %v80_v61, %v84_v62  ;;  %v1499_v9 = vcombine.high %v199_v3, %v203_v4  ;;  %v1501_v10 = vcombine.high %v200_v5, %v204_v6  ;;  %v147_v61 = vld [vmem:[#allocation2 + $0x230] sm:$0xff]  ;;  %v144_v62 = vld [vmem:[#allocation2 + $0x218] sm:$0xff] }
  0x6a   :  { %878 = vmatmul.mubr.bf16.vlgmr.msra.gmra.mxu0 %v1770_v12  ;;  %919 = vmatmul.mubr.bf16.vlgmr.msra.gmra.mxu1 %v1770_v12 }
  0x6b   :  { %928 = vmatpush1.bf16.msra.mxu0 %v1434_v15  ;;  %969 = vmatpush1.bf16.msra.mxu1 %v1436_v16  ;;  %v196_v15 = vld [vmem:[#allocation2 + $0x3b8] sm:$0xff]  ;;  %v1498_v16 = vcombine.low %v199_v3, %v203_v4  ;;  %v1442_v4 = vcombine.low %v143_v60, %v147_v61 }
  0x6c   :  { %929 = vmatprep.subr.bf16.mxu0 %v1427_v17  ;;  %970 = vmatprep.subr.bf16.mxu1 %v1429_v18  ;;  %v1500_v17 = vcombine.low %v200_v5, %v204_v6  ;;  %v1491_v18 = vcombine.high %v191_v11, %v195_v13  ;;  %v1493_v19 = vcombine.high %v192_v14, %v196_v15  ;;  %v1582_v6 = vld [vmem:[#allocation7 + $0x78] sm:$0xff]  }
  0x6d   :  { %959 = vmatprep.mubr.bf16.mxu0 %v1763_v57  ;;  %1000 = vmatprep.mubr.bf16.mxu1 %v1763_v57  ;;  %v1405_v57 = vcombine.high %v104_v37, %v108_v38  ;;  %v171_v37 = vld [vmem:[#allocation2 + $0x2f0] sm:$0xff]  ;;  %v168_v38 = vld [vmem:[#allocation2 + $0x2d8] sm:$0xff] }
  0x6f   :  { %930 = vmatpush1.bf16.msra.mxu0 %v1426_v23  ;;  %971 = vmatpush1.bf16.msra.mxu1 %v1428_v24  ;;  %v188_v23 = vld [vmem:[#allocation2 + $0x378] sm:$0xff]  ;;  %v1490_v24 = vcombine.low %v191_v11, %v195_v13  ;;  %v1587_v11 = vld [vmem:[#allocation7 + $0x28] sm:$0xff]   ;;  %v1588_v13 = vld [vmem:[#allocation7 + $0x60] sm:$0xff]  }
  0x70   :  { %931 = vmatprep.subr.bf16.mxu0 %v1419_v25  ;;  %972 = vmatprep.subr.bf16.mxu1 %v1421_v26  ;;  %v1492_v25 = vcombine.low %v192_v14, %v196_v15  ;;  %v1483_v26 = vcombine.high %v183_v20, %v187_v21  ;;  %v1485_v27 = vcombine.high %v184_v22, %v188_v23  ;;  %v1589_v14 = vld [vmem:[#allocation7 + $0x20] sm:$0xff]   ;;  %v1590_v15 = vld [vmem:[#allocation7 + $0x58] sm:$0xff]  }
  0x73   :  { %932 = vmatpush1.bf16.msra.mxu0 %v1418_v31  ;;  %973 = vmatpush1.bf16.msra.mxu1 %v1420_v32  ;;  %v180_v31 = vld [vmem:[#allocation2 + $0x338] sm:$0xff]  ;;  %v1482_v32 = vcombine.low %v183_v20, %v187_v21  ;;  %v1596_v20 = vld [vmem:[#allocation7 + $0x40] sm:$0xff]  }
  0x74   :  { %933 = vmatprep.subr.bf16.mxu0 %v1411_v33  ;;  %974 = vmatprep.subr.bf16.mxu1 %v1413_v34  ;;  %v1484_v33 = vcombine.low %v184_v22, %v188_v23  ;;  %v1475_v34 = vcombine.high %v175_v28, %v179_v29  ;;  %v1477_v35 = vcombine.high %v176_v30, %v180_v31  ;;  %v1597_v21 = vld [vmem:[#allocation7] sm:$0xff]  }
  0x77   :  { %934 = vmatpush1.bf16.msra.mxu0 %v1410_v39  ;;  %975 = vmatpush1.bf16.msra.mxu1 %v1412_v40  ;;  %v172_v39 = vld [vmem:[#allocation2 + $0x2f8] sm:$0xff]  ;;  %v1474_v40 = vcombine.low %v175_v28, %v179_v29 }
  0x78   :  { %935 = vmatprep.subr.bf16.mxu0 %v1403_v41  ;;  %976 = vmatprep.subr.bf16.mxu1 %v1405_v57  ;;  %v1476_v41 = vcombine.low %v176_v30, %v180_v31  ;;  %v1467_v57 = vcombine.high %v167_v36, %v171_v37  ;;  %v1469_v42 = vcombine.high %v168_v38, %v172_v39 }
  0x7b   :  { %936 = vmatpush1.bf16.msra.mxu0 %v1402_v46  ;;  %977 = vmatpush1.bf16.msra.mxu1 %v1404_v47  ;;  %v164_v46 = vld [vmem:[#allocation2 + $0x2b8] sm:$0xff]  ;;  %v1466_v47 = vcombine.low %v167_v36, %v171_v37 }
  0x7c   :  { %937 = vmatprep.subr.bf16.mxu0 %v1395_v48  ;;  %978 = vmatprep.subr.bf16.mxu1 %v1397_v49  ;;  %v1468_v48 = vcombine.low %v168_v38, %v172_v39  ;;  %v1459_v49 = vcombine.high %v159_v43, %v163_v44  ;;  %v1461_v50 = vcombine.high %v160_v45, %v164_v46 }
  0x7f   :  { %938 = vmatpush1.bf16.msra.mxu0 %v1394_v54  ;;  %979 = vmatpush1.bf16.msra.mxu1 %v1396_v55  ;;  %v156_v54 = vld [vmem:[#allocation2 + $0x278] sm:$0xff]  ;;  %v1458_v55 = vcombine.low %v159_v43, %v163_v44 }
  0x80   :  { %939 = vmatprep.subr.bf16.mxu0 %v1387_v56  ;;  %980 = vmatprep.subr.bf16.mxu1 %v1389_v58  ;;  %v1460_v56 = vcombine.low %v160_v45, %v164_v46  ;;  %v1451_v58 = vcombine.high %v151_v51, %v155_v52  ;;  %v1453_v59 = vcombine.high %v152_v53, %v156_v54 }
  0x83   :  { %940 = vmatpush1.bf16.msra.mxu0 %v1386_v63  ;;  %981 = vmatpush1.bf16.msra.mxu1 %v1388_v0  ;;  %v148_v63 = vld [vmem:[#allocation2 + $0x238] sm:$0xff]  ;;  %v1450_v0 = vcombine.low %v151_v51, %v155_v52 }
  0x84   :  { %941 = vmatprep.subr.bf16.mxu0 %v1379_v1  ;;  %982 = vmatprep.subr.bf16.mxu1 %v1381_v2  ;;  %v1452_v1 = vcombine.low %v152_v53, %v156_v54  ;;  %v1443_v2 = vcombine.high %v143_v60, %v147_v61  ;;  %v1445_v3 = vcombine.high %v144_v62, %v148_v63 }
  0x85   :  { %v1444_v5 = vcombine.low %v144_v62, %v148_v63  ;;  %v1598_v63 = vld [vmem:[%s1810_s5 + $0x8] sm:$0xff]  }
  0x87   :  { %942 = vmatpush1.bf16.msra.mxu0 %v1378_v7  ;;  %983 = vmatpush1.bf16.msra.mxu1 %v1380_v8  ;;  %v1583_v7 = vld [vmem:[#allocation7 + $0x38] sm:$0xff]   ;;  %v1584_v8 = vld [vmem:[#allocation7 + $0x70] sm:$0xff]  }
  0x88   :  { %943 = vmatprep.subr.bf16.mxu0 %v1499_v9  ;;  %984 = vmatprep.subr.bf16.mxu1 %v1501_v10  ;;  %v1585_v9 = vld [vmem:[#allocation7 + $0x30] sm:$0xff]   ;;  %v1586_v10 = vld [vmem:[#allocation7 + $0x68] sm:$0xff]  }
  0x8b   :  { %944 = vmatpush2.bf16.msra.mxu0 %v1498_v16  ;;  %985 = vmatpush2.bf16.msra.mxu1 %v1500_v17  ;;  %v1591_v16 = vld [vmem:[#allocation7 + $0x18] sm:$0xff]   ;;  %v1593_v17 = vld [vmem:[#allocation7 + $0x10] sm:$0xff]  }
  0x8c   :  { %945 = vmatprep.subr.bf16.mxu0 %v1491_v18  ;;  %986 = vmatprep.subr.bf16.mxu1 %v1493_v19  ;;  %v1594_v18 = vld [vmem:[#allocation7 + $0x48] sm:$0xff]  }
  0x8d   :  { %v1595_v19 = vld [vmem:[#allocation7 + $0x8] sm:$0xff]  }
  0x8f   :  { %946 = vmatpush2.bf16.msra.mxu0 %v1490_v24  ;;  %987 = vmatpush2.bf16.msra.mxu1 %v1492_v25 }
  0x90   :  { %947 = vmatprep.subr.bf16.mxu0 %v1483_v26  ;;  %988 = vmatprep.subr.bf16.mxu1 %v1485_v27 }
  0x93   :  { %948 = vmatpush2.bf16.msra.mxu0 %v1482_v32  ;;  %989 = vmatpush2.bf16.msra.mxu1 %v1484_v33  ;;  %v1017_v32 = vlaneseq }
  0x94   :  { %949 = vmatprep.subr.bf16.mxu0 %v1475_v34  ;;  %990 = vmatprep.subr.bf16.mxu1 %v1477_v35  ;;  %v1015_v35 = vld [vmem:[#allocation5] sm:$0x3] }
  0x95   :  { %v1018_v33 = vshrl.u32 %v1017_v32, 7 }
  0x97   :  { %950 = vmatpush2.bf16.msra.mxu0 %v1474_v40  ;;  %991 = vmatpush2.bf16.msra.mxu1 %v1476_v41  ;;  %v1019_v34 = vsub.s32 0, %v1018_v33  ;;  %v1023_v37 = vsub.s32 1, %v1018_v33 }
  0x98   :  { %951 = vmatprep.subr.bf16.mxu0 %v1467_v57  ;;  %992 = vmatprep.subr.bf16.mxu1 %v1469_v42 }
  0x99   :  { %v1020_v40 = vrot.slane %v1015_v35, %v1019_v34  ;;  %v1024_v44 = vrot.slane %v1015_v35, %v1023_v37 }
  0x9b   :  { %952 = vmatpush2.bf16.msra.mxu0 %v1466_v47  ;;  %993 = vmatpush2.bf16.msra.mxu1 %v1468_v48 }
  0x9c   :  { %953 = vmatprep.subr.bf16.mxu0 %v1459_v49  ;;  %994 = vmatprep.subr.bf16.mxu1 %v1461_v50 }
  0x9f   :  { %954 = vmatpush2.bf16.msra.mxu0 %v1458_v55  ;;  %995 = vmatpush2.bf16.msra.mxu1 %v1460_v56  ;;  %v1695_v56 = vmov 0.0  }
  0xa0   :  { %955 = vmatprep.subr.bf16.mxu0 %v1451_v58  ;;  %996 = vmatprep.subr.bf16.mxu1 %v1453_v59 }
  0xa3   :  { %956 = vmatpush2.bf16.msra.mxu0 %v1450_v0  ;;  %997 = vmatpush2.bf16.msra.mxu1 %v1452_v1  ;;  %v1599_v0 = vld [vmem:[%s1810_s5] sm:$0xff]  }
  0xa4   :  { %957 = vmatprep.subr.bf16.mxu0 %v1443_v2  ;;  %998 = vmatprep.subr.bf16.mxu1 %v1445_v3  ;;  %v1518_v3 = vld [vmem:[%s1809_s4] ss:$0 sm:$0xff] }
  0xa7   :  { %958 = vmatpush2.bf16.msra.mxu0 %v1442_v4  ;;  %999 = vmatpush2.bf16.msra.mxu1 %v1444_v5 }
  0xa8   :  { %1527 = vmatprep.subr.bf16.mxu0 %v1582_v6  ;;  %1555 = vmatprep.subr.bf16.mxu1 %v1695_v56 }
  0xaa   :  { %960 = vmatmul.mubr.bf16.vlgmr.msra.gmra.mxu0 %v1770_v12  ;;  %1001 = vmatmul.mubr.bf16.vlgmr.msra.gmra.mxu1 %v1770_v12  ;;  %v1592_v12 = vld [vmem:[#allocation7 + $0x50] sm:$0xff]  }
  0xab   :  { %1528 = vmatpush3.bf16.msra.mxu0 %v1583_v7  ;;  %1556 = vmatpush3.bf16.msra.mxu1 %v1598_v63 }
  0xac   :  { %1529 = vmatprep.subr.bf16.mxu0 %v1584_v8  ;;  %1557 = vmatprep.subr.bf16.mxu1 %v1695_v56  ;;  %v1600_v8 = vld [vmem:[%s1812_s7 + $0x8] sm:$0xff]  }
  0xad   :  { %1559 = vmatprep.mubr.msk.bf16.mxu1 %vm1697_vm0, %v1695_v56 }
  0xaf   :  { %1530 = vmatpush3.bf16.msra.mxu0 %v1585_v9  ;;  %1558 = vmatpush3.bf16.msra.mxu1 %v1599_v0 }
  0xb0   :  { %1531 = vmatprep.subr.bf16.mxu0 %v1586_v10  ;;  %1563 = vmatprep.subr.bf16.mxu1 %v1695_v56  ;;  %v1601_v10 = vld [vmem:[%s1812_s7] sm:$0xff]   ;;  %s1364_s7 = sshll.u32 %s1698_s20, 4  ;;  %s1365_s7 = int_to_ptr.vmem [resolvable:$true] %s1364_s7 }
  0xb1   :  { %p1667_p2 = scmp.lt.s32.totalorder %s1365_s7, %s1365_s7 }
  0xb3   :  { %1532 = vmatpush3.bf16.msra.mxu0 %v1587_v11  ;;  %v1519_v11 = vld [vmem:[%s1811_s6] ss:$0 sm:$0xff]  ;;  %s1662_s6 = scalar_lea.vmem %s1365_s7, 128 }
  0xb4   :  { %1533 = vmatprep.subr.bf16.mxu0 %v1588_v13  ;;  %p1663_p1 = scmp.ne.s32.totalorder %s1365_s7, %s1662_s6  ;;  %p1668_p3 = scmp.lt.s32.totalorder %s1662_s6, %s1662_s6 }
  0xb6   :  { %p1669_p4 = por %p1668_p3, %p1667_p2 }
  0xb7   :  { %1534 = vmatpush3.bf16.msra.mxu0 %v1589_v14 }
  0xb8   :  { %1535 = vmatprep.subr.bf16.mxu0 %v1590_v15  ;;  %p1670_p5 = pnand %p1669_p4, %p1663_p1 }
  0xbb   :  { %1536 = vmatpush3.bf16.msra.mxu0 %v1591_v16 }
  0xbc   :  { %1537 = vmatprep.subr.bf16.mxu0 %v1592_v12 }
  0xbf   :  { %1538 = vmatpush3.bf16.msra.mxu0 %v1593_v17 }
  0xc0   :  { %1539 = vmatprep.subr.bf16.mxu0 %v1594_v18 }
  0xc3   :  { %1540 = vmatpush3.bf16.msra.mxu0 %v1595_v19  ;;  %v1523_v19 = vld [vmem:[%s1813_s8] ss:$0 sm:$0xff] }
  0xc4   :  { %1541 = vmatprep.subr.bf16.mxu0 %v1596_v20 }
  0xc7   :  { %1542 = vmatpush3.bf16.msra.mxu0 %v1597_v21 }
 0x12a   :  { %v879_v22 = vpop.f32.mrf.mxu0  ;;  %v920_v23 = vpop.f32.mrf.mxu1 }
 0x12b   :  { %v1009_v24 = vmax.f32 %v879_v22, %v920_v23 }
 0x12c   :  { %v881_v25 = vpop.f32.mrf.mxu0  ;;  %v922_v26 = vpop.f32.mrf.mxu1 }
 0x12d   :  { %v1010_v27 = vmax.f32 %v881_v25, %v922_v26 }
 0x12e   :  { %v883_v28 = vpop.f32.mrf.mxu0  ;;  %v924_v29 = vpop.f32.mrf.mxu1 }
 0x130   :  { %v884_v30 = vpop.f32.mrf.mxu0  ;;  %v925_v31 = vpop.f32.mrf.mxu1 }
 0x16a   :  { %v961_v36 = vpop.f32.mrf.mxu0  ;;  %v1002_v38 = vpop.f32.mrf.mxu1 }
 0x16b   :  { %v1011_v39 = vmax.f32 %v961_v36, %v1002_v38 }
 0x16c   :  { %v963_v41 = vpop.f32.mrf.mxu0  ;;  %v1004_v57 = vpop.f32.mrf.mxu1 }
 0x16d   :  { %v1013_v42 = vmax.f32 %v1009_v24, %v1011_v39  ;;  %v1012_v43 = vmax.f32 %v963_v41, %v1004_v57 }
 0x16e   :  { %v965_v45 = vpop.f32.mrf.mxu0  ;;  %v1006_v46 = vpop.f32.mrf.mxu1 }
 0x16f   :  { %v1027_v47 = vadd.f32 %v1020_v40, %v1013_v42  ;;  %v1014_v48 = vmax.f32 %v1010_v27, %v1012_v43 }
 0x170   :  { %v966_v49 = vpop.f32.mrf.mxu0  ;;  %v1007_v50 = vpop.f32.mrf.mxu1 }
 0x171   :  { %v1028_v51 = vadd.f32 %v1024_v44, %v1014_v48  ;;  %v1029_v52 = vmax.f32 %v1027_v47, 0.0 }
 0x173   :  { %v1030_v53 = vmax.f32 %v1028_v51, 0.0  ;;  %v1031_v55 = vpack.c.bf16 %v1029_v52, %v1029_v52 }
 0x175   :  { %v1032_v54 = vpack.c.bf16 %v1030_v53, %v1030_v53 }
 0x177   :  { %1193 = vmatprep.mubr.bf16.mxu0 %v1032_v54 }
 0x178   :  { %1194 = vmatmul.mubr.bf16.vlgmr.msra.gmra.mxu0 %v1031_v55 }
 0x238   :  { %v1543_v58 = vpop.f32.mrf.mxu0 }
 0x23a   :  { %v1544_v59 = vpop.f32.mrf.mxu0 }
 0x23b   :  { %v1545_v60 = vadd.f32 %v1544_v59, %v1543_v58 }
 0x23c   :  { %v1546_v61 = vpop.f32.mrf.mxu0 }
 0x23d   :  { %1202 = vrot.lane.b32.xlu0 %v1545_v60, %s1696_s0 }
 0x23e   :  { %v1547_v62 = vpop.f32.mrf.mxu0 }
 0x2af   :  { %v1203_v1 = vpop.permute.xlu0 %1202 }
 0x2b0   :  { %v1205_v2 = vmax.f32 %v1545_v60, %v1203_v1 }
 0x2b2   :  { %1207 = vrot.lane.b32.xlu0 %v1205_v2, %s1693_s2 }
 0x324   :  { %v1208_v4 = vpop.permute.xlu0 %1207 }
 0x325   :  { %v1210_v5 = vmax.f32 %v1205_v2, %v1208_v4 }
 0x327   :  { %v1218_v6 = vadd.f32 %v1518_v3, %v1210_v5 }
 0x329   :  { %v1219_v7 = vmax.f32 %v1218_v6, 0.0 }
 0x32b   :  { %v1220_v9 = vpack.c.bf16 %v1219_v7, %v1219_v7 }
 0x32d   :  { %1560 = vmatmul.mubr.msk.bf16.vlgmr.msra.gmra.mxu1 %vm1244_vm1, %v1220_v9 }
 0x32e   :  { %1564 = vmatpush3.bf16.msra.mxu1 %v1600_v8  ;;  %1567 = vmatprep.mubr.msk.bf16.mxu1 %vm1697_vm0, %v1695_v56 }
 0x32f   :  { %1565 = vmatprep.subr.bf16.mxu1 %v1695_v56 }
 0x332   :  { %1566 = vmatpush3.bf16.msra.mxu1 %v1601_v10 }
 0x3ed   :  { %v1282_v13 = vpop.f32.mrf.mxu1 }
 0x3ee   :  { %v1283_v14 = vadd.f32 %v1519_v11, %v1282_v13 }
 0x3ef   :  { %v1561_v15 = vpop.f32.mrf.mxu1 }
 0x3f0   :  { %v1288_v16 = vmax.f32 %v1283_v14, 0.0 }
 0x3f1   :  { %v1285_v12 = vpop.f32.mrf.mxu1 }
 0x3f2   :  { %v1289_v17 = vpack.c.bf16 %v1288_v16, %v1288_v16 }
 0x3f3   :  { %v1562_v18 = vpop.f32.mrf.mxu1 }
 0x3f4   :  { %1568 = vmatmul.mubr.msk.bf16.vlgmr.msra.gmra.mxu1 %vm1244_vm1, %v1289_v17 }
 0x4b4   :  { %v1350_v20 = vpop.f32.mrf.mxu1 }
 0x4b5   :  { %v1351_v21 = vadd.f32 %v1523_v19, %v1350_v20 }
 0x4b6   :  { %v1569_v22 = vpop.f32.mrf.mxu1 }
 0x4b7   :  { %1357 = vst.msk [vmem:[#allocation8] sm:$0xff] %vm1356_vm2, %v1351_v21 }
 0x4b8   :  { %v1353_v23 = vpop.f32.mrf.mxu1 }
 0x4b9   :  { %1673 = shalt.err (!%p1670_p5)
}
 0x4ba   :  { %1367 = dma.vmem_to_hbm [thread:$0]  %s1365_s7, 128, %s1814_s9, [#allocation4]   ;;  %v1570_v24 = vpop.f32.mrf.mxu1 }
 0x4bb   :  { %1686 = dma.done.wait [#allocation4], 128  }
 0x4bc   :  { %1687 = vsyncadd [#allocation4], 4294967168 }
 0x4bd   :  { %1371 = vsyncpa [#allocation3], 1 }
 0x4be   :  { %1372 = vsyncpa [#allocation6], 1 }
 0x4bf   :  { %1373 = vsyncpa [#allocation4], 1 }

</bundles_post_ra>
